<compile_context>
chip_gen: v7x
topology: tpu7x:2x2x1
jax: 0.10.0
libtpu: 0.0.40
codegen_flags: <defaults>
</compile_context>

<pallas_src>
import math

import jax
import jax.numpy as jnp
from jax.experimental import pallas as pl
from jax.experimental.pallas import tpu as pltpu

INPUT_SIZE = 4
HIDDEN = 3
OUTPUT_SIZE = 10

# Static offsets into the packed parameter slab (weights kept in PyTorch
# (out, in) row-major order, so w[j, k] = slab[w_off + j * n_in + k]).
W1_OFF = 0
B1_OFF = W1_OFF + HIDDEN * INPUT_SIZE
W2_OFF = B1_OFF + HIDDEN
B2_OFF = W2_OFF + HIDDEN * HIDDEN
W3_OFF = B2_OFF + HIDDEN
B3_OFF = W3_OFF + OUTPUT_SIZE * HIDDEN
PARAM_COUNT = B3_OFF + OUTPUT_SIZE  # 67 f32 scalars


def mlp_kernel(params_ref, x_ref, o_ref):
    """params_ref: (PARAM_COUNT,) f32 in SMEM.
    x_ref: (INPUT_SIZE, B) f32 in VMEM (batch on lanes).
    o_ref: (OUTPUT_SIZE, B) f32 in VMEM (lane-dense output)."""

    def dense_rows(rows_in, w_off, b_off, n_in, n_out, relu):
        # Each output row j = bias[j] + sum_k w[j, k] * row_k  -> VPU broadcast FMAs.
        outs = []
        for j in range(n_out):
            acc = params_ref[b_off + j] + params_ref[w_off + j * n_in] * rows_in[0]
            for k in range(1, n_in):
                acc = acc + params_ref[w_off + j * n_in + k] * rows_in[k]
            if relu:
                acc = jnp.maximum(acc, 0.0)
            outs.append(acc)
        return outs

    # Feature rows of x, each a lane-contiguous (1, B) slab.
    x_rows = [x_ref[k : k + 1, :] for k in range(INPUT_SIZE)]

    h1 = dense_rows(x_rows, W1_OFF, B1_OFF, INPUT_SIZE, HIDDEN, relu=True)
    h2 = dense_rows(h1, W2_OFF, B2_OFF, HIDDEN, HIDDEN, relu=True)
    out = dense_rows(h2, W3_OFF, B3_OFF, HIDDEN, OUTPUT_SIZE, relu=False)

    # Single lane-dense store of the whole (OUTPUT_SIZE, B) result.
    o_ref[...] = jnp.concatenate(out, axis=0)


def pack_params(params):
    """One-time (init-time) packing: flatten all weights/biases into one f32 slab."""
    (w1, b1), (w2, b2), (w3, b3) = params["hid1"], params["hid2"], params["outp"]
    return jnp.concatenate(
        [w1.ravel(), b1.ravel(), w2.ravel(), b2.ravel(), w3.ravel(), b3.ravel()]
    ).astype(jnp.float32)


@jax.jit
def classification_net_forward(x, packed_params):
    """x: (B, INPUT_SIZE) f32; packed_params: (PARAM_COUNT,) f32 from pack_params()."""
    B = x.shape[0]
    out_t = pl.pallas_call(
        mlp_kernel,
        out_shape=jax.ShapeDtypeStruct((OUTPUT_SIZE, B), jnp.float32),
        in_specs=[
            pl.BlockSpec(memory_space=pltpu.MemorySpace.SMEM),  # packed params
            pl.BlockSpec(memory_space=pltpu.MemorySpace.VMEM),  # x (F, B)
        ],
        out_specs=pl.BlockSpec(memory_space=pltpu.MemorySpace.VMEM),
    )(packed_params, x.T)  # batch-on-lanes: kernel sees (F, B)
    return out_t.T  # back to PyTorch layout (B, OUTPUT_SIZE)


def init_params(key, input_size, output_size):
    """Deterministic init mimicking nn.Linear default (U[-1/sqrt(fan_in), 1/sqrt(fan_in)])."""
    sizes = [(input_size, HIDDEN), (HIDDEN, HIDDEN), (HIDDEN, output_size)]
    names = ["hid1", "hid2", "outp"]
    params = {}
    for name, (fan_in, fan_out) in zip(names, sizes):
        key, kw, kb = jax.random.split(key, 3)
        bound = 1.0 / math.sqrt(fan_in)
        w = jax.random.uniform(kw, (fan_out, fan_in), jnp.float32, -bound, bound)
        b = jax.random.uniform(kb, (fan_out,), jnp.float32, -bound, bound)
        params[name] = (w, b)
    return params


def reference_forward(x, params):
    (w1, b1), (w2, b2), (w3, b3) = params["hid1"], params["hid2"], params["outp"]
    z = jnp.maximum(x @ w1.T + b1, 0.0)
    z = jnp.maximum(z @ w2.T + b2, 0.0)
    return z @ w3.T + b3


if __name__ == "__main__":
    key = jax.random.PRNGKey(0)
    k_params, k_x = jax.random.split(key)

    batch = 256  # matches the module spec: x = torch.rand(size=(256, 4))
    params = init_params(k_params, INPUT_SIZE, OUTPUT_SIZE)
    packed = pack_params(params)  # done once, outside the forward path
    x = jax.random.uniform(k_x, (batch, INPUT_SIZE), jnp.float32)

    z = classification_net_forward(x, packed)
    z = jax.block_until_ready(z)

    z_ref = reference_forward(x, params)
    assert z.shape == (batch, OUTPUT_SIZE)
    assert jnp.allclose(z, z_ref, atol=1e-5, rtol=1e-5)

    print("KERNEL_OK")
</pallas_src>

<mosaic_0001>
module attributes {stable_mosaic.version = 11 : i64} {
  func.func @mlp_kernel(%arg0: memref<67xf32, #tpu.memory_space<smem>>, %arg1: memref<4x256xf32, #tpu.memory_space<vmem>>, %arg2: memref<10x256xf32, #tpu.memory_space<vmem>>) attributes {dimension_semantics = [], scalar_prefetch = 0 : i64, scratch_operands = 0 : i64, tpu.core_type = #tpu.core_type<tc>} {
    %c0 = arith.constant 0 : index
    %c0_0 = arith.constant 0 : index
    %0 = vector.load %arg1[%c0, %c0_0] : memref<4x256xf32, #tpu.memory_space<vmem>>, vector<1x256xf32>
    %c1 = arith.constant 1 : index
    %c0_1 = arith.constant 0 : index
    %1 = vector.load %arg1[%c1, %c0_1] : memref<4x256xf32, #tpu.memory_space<vmem>>, vector<1x256xf32>
    %c2 = arith.constant 2 : index
    %c0_2 = arith.constant 0 : index
    %2 = vector.load %arg1[%c2, %c0_2] : memref<4x256xf32, #tpu.memory_space<vmem>>, vector<1x256xf32>
    %c3 = arith.constant 3 : index
    %c0_3 = arith.constant 0 : index
    %3 = vector.load %arg1[%c3, %c0_3] : memref<4x256xf32, #tpu.memory_space<vmem>>, vector<1x256xf32>
    %c12 = arith.constant 12 : index
    %4 = memref.load %arg0[%c12] : memref<67xf32, #tpu.memory_space<smem>>
    %c0_4 = arith.constant 0 : index
    %5 = memref.load %arg0[%c0_4] : memref<67xf32, #tpu.memory_space<smem>>
    %6 = vector.broadcast %5 : f32 to vector<1x256xf32>
    %7 = arith.mulf %6, %0 : vector<1x256xf32>
    %8 = vector.broadcast %4 : f32 to vector<1x256xf32>
    %9 = arith.addf %8, %7 : vector<1x256xf32>
    %c1_5 = arith.constant 1 : index
    %10 = memref.load %arg0[%c1_5] : memref<67xf32, #tpu.memory_space<smem>>
    %11 = vector.broadcast %10 : f32 to vector<1x256xf32>
    %12 = arith.mulf %11, %1 : vector<1x256xf32>
    %13 = arith.addf %9, %12 : vector<1x256xf32>
    %c2_6 = arith.constant 2 : index
    %14 = memref.load %arg0[%c2_6] : memref<67xf32, #tpu.memory_space<smem>>
    %15 = vector.broadcast %14 : f32 to vector<1x256xf32>
    %16 = arith.mulf %15, %2 : vector<1x256xf32>
    %17 = arith.addf %13, %16 : vector<1x256xf32>
    %c3_7 = arith.constant 3 : index
    %18 = memref.load %arg0[%c3_7] : memref<67xf32, #tpu.memory_space<smem>>
    %19 = vector.broadcast %18 : f32 to vector<1x256xf32>
    %20 = arith.mulf %19, %3 : vector<1x256xf32>
    %21 = arith.addf %17, %20 : vector<1x256xf32>
    %cst = arith.constant 0.000000e+00 : f32
    %22 = vector.broadcast %cst : f32 to vector<1x256xf32>
    %23 = arith.maximumf %21, %22 : vector<1x256xf32>
    %c13 = arith.constant 13 : index
    %24 = memref.load %arg0[%c13] : memref<67xf32, #tpu.memory_space<smem>>
    %c4 = arith.constant 4 : index
    %25 = memref.load %arg0[%c4] : memref<67xf32, #tpu.memory_space<smem>>
    %26 = vector.broadcast %25 : f32 to vector<1x256xf32>
    %27 = arith.mulf %26, %0 : vector<1x256xf32>
    %28 = vector.broadcast %24 : f32 to vector<1x256xf32>
    %29 = arith.addf %28, %27 : vector<1x256xf32>
    %c5 = arith.constant 5 : index
    %30 = memref.load %arg0[%c5] : memref<67xf32, #tpu.memory_space<smem>>
    %31 = vector.broadcast %30 : f32 to vector<1x256xf32>
    %32 = arith.mulf %31, %1 : vector<1x256xf32>
    %33 = arith.addf %29, %32 : vector<1x256xf32>
    %c6 = arith.constant 6 : index
    %34 = memref.load %arg0[%c6] : memref<67xf32, #tpu.memory_space<smem>>
    %35 = vector.broadcast %34 : f32 to vector<1x256xf32>
    %36 = arith.mulf %35, %2 : vector<1x256xf32>
    %37 = arith.addf %33, %36 : vector<1x256xf32>
    %c7 = arith.constant 7 : index
    %38 = memref.load %arg0[%c7] : memref<67xf32, #tpu.memory_space<smem>>
    %39 = vector.broadcast %38 : f32 to vector<1x256xf32>
    %40 = arith.mulf %39, %3 : vector<1x256xf32>
    %41 = arith.addf %37, %40 : vector<1x256xf32>
    %cst_8 = arith.constant 0.000000e+00 : f32
    %42 = vector.broadcast %cst_8 : f32 to vector<1x256xf32>
    %43 = arith.maximumf %41, %42 : vector<1x256xf32>
    %c14 = arith.constant 14 : index
    %44 = memref.load %arg0[%c14] : memref<67xf32, #tpu.memory_space<smem>>
    %c8 = arith.constant 8 : index
    %45 = memref.load %arg0[%c8] : memref<67xf32, #tpu.memory_space<smem>>
    %46 = vector.broadcast %45 : f32 to vector<1x256xf32>
    %47 = arith.mulf %46, %0 : vector<1x256xf32>
    %48 = vector.broadcast %44 : f32 to vector<1x256xf32>
    %49 = arith.addf %48, %47 : vector<1x256xf32>
    %c9 = arith.constant 9 : index
    %50 = memref.load %arg0[%c9] : memref<67xf32, #tpu.memory_space<smem>>
    %51 = vector.broadcast %50 : f32 to vector<1x256xf32>
    %52 = arith.mulf %51, %1 : vector<1x256xf32>
    %53 = arith.addf %49, %52 : vector<1x256xf32>
    %c10 = arith.constant 10 : index
    %54 = memref.load %arg0[%c10] : memref<67xf32, #tpu.memory_space<smem>>
    %55 = vector.broadcast %54 : f32 to vector<1x256xf32>
    %56 = arith.mulf %55, %2 : vector<1x256xf32>
    %57 = arith.addf %53, %56 : vector<1x256xf32>
    %c11 = arith.constant 11 : index
    %58 = memref.load %arg0[%c11] : memref<67xf32, #tpu.memory_space<smem>>
    %59 = vector.broadcast %58 : f32 to vector<1x256xf32>
    %60 = arith.mulf %59, %3 : vector<1x256xf32>
    %61 = arith.addf %57, %60 : vector<1x256xf32>
    %cst_9 = arith.constant 0.000000e+00 : f32
    %62 = vector.broadcast %cst_9 : f32 to vector<1x256xf32>
    %63 = arith.maximumf %61, %62 : vector<1x256xf32>
    %c24 = arith.constant 24 : index
    %64 = memref.load %arg0[%c24] : memref<67xf32, #tpu.memory_space<smem>>
    %c15 = arith.constant 15 : index
    %65 = memref.load %arg0[%c15] : memref<67xf32, #tpu.memory_space<smem>>
    %66 = vector.broadcast %65 : f32 to vector<1x256xf32>
    %67 = arith.mulf %66, %23 : vector<1x256xf32>
    %68 = vector.broadcast %64 : f32 to vector<1x256xf32>
    %69 = arith.addf %68, %67 : vector<1x256xf32>
    %c16 = arith.constant 16 : index
    %70 = memref.load %arg0[%c16] : memref<67xf32, #tpu.memory_space<smem>>
    %71 = vector.broadcast %70 : f32 to vector<1x256xf32>
    %72 = arith.mulf %71, %43 : vector<1x256xf32>
    %73 = arith.addf %69, %72 : vector<1x256xf32>
    %c17 = arith.constant 17 : index
    %74 = memref.load %arg0[%c17] : memref<67xf32, #tpu.memory_space<smem>>
    %75 = vector.broadcast %74 : f32 to vector<1x256xf32>
    %76 = arith.mulf %75, %63 : vector<1x256xf32>
    %77 = arith.addf %73, %76 : vector<1x256xf32>
    %cst_10 = arith.constant 0.000000e+00 : f32
    %78 = vector.broadcast %cst_10 : f32 to vector<1x256xf32>
    %79 = arith.maximumf %77, %78 : vector<1x256xf32>
    %c25 = arith.constant 25 : index
    %80 = memref.load %arg0[%c25] : memref<67xf32, #tpu.memory_space<smem>>
    %c18 = arith.constant 18 : index
    %81 = memref.load %arg0[%c18] : memref<67xf32, #tpu.memory_space<smem>>
    %82 = vector.broadcast %81 : f32 to vector<1x256xf32>
    %83 = arith.mulf %82, %23 : vector<1x256xf32>
    %84 = vector.broadcast %80 : f32 to vector<1x256xf32>
    %85 = arith.addf %84, %83 : vector<1x256xf32>
    %c19 = arith.constant 19 : index
    %86 = memref.load %arg0[%c19] : memref<67xf32, #tpu.memory_space<smem>>
    %87 = vector.broadcast %86 : f32 to vector<1x256xf32>
    %88 = arith.mulf %87, %43 : vector<1x256xf32>
    %89 = arith.addf %85, %88 : vector<1x256xf32>
    %c20 = arith.constant 20 : index
    %90 = memref.load %arg0[%c20] : memref<67xf32, #tpu.memory_space<smem>>
    %91 = vector.broadcast %90 : f32 to vector<1x256xf32>
    %92 = arith.mulf %91, %63 : vector<1x256xf32>
    %93 = arith.addf %89, %92 : vector<1x256xf32>
    %cst_11 = arith.constant 0.000000e+00 : f32
    %94 = vector.broadcast %cst_11 : f32 to vector<1x256xf32>
    %95 = arith.maximumf %93, %94 : vector<1x256xf32>
    %c26 = arith.constant 26 : index
    %96 = memref.load %arg0[%c26] : memref<67xf32, #tpu.memory_space<smem>>
    %c21 = arith.constant 21 : index
    %97 = memref.load %arg0[%c21] : memref<67xf32, #tpu.memory_space<smem>>
    %98 = vector.broadcast %97 : f32 to vector<1x256xf32>
    %99 = arith.mulf %98, %23 : vector<1x256xf32>
    %100 = vector.broadcast %96 : f32 to vector<1x256xf32>
    %101 = arith.addf %100, %99 : vector<1x256xf32>
    %c22 = arith.constant 22 : index
    %102 = memref.load %arg0[%c22] : memref<67xf32, #tpu.memory_space<smem>>
    %103 = vector.broadcast %102 : f32 to vector<1x256xf32>
    %104 = arith.mulf %103, %43 : vector<1x256xf32>
    %105 = arith.addf %101, %104 : vector<1x256xf32>
    %c23 = arith.constant 23 : index
    %106 = memref.load %arg0[%c23] : memref<67xf32, #tpu.memory_space<smem>>
    %107 = vector.broadcast %106 : f32 to vector<1x256xf32>
    %108 = arith.mulf %107, %63 : vector<1x256xf32>
    %109 = arith.addf %105, %108 : vector<1x256xf32>
    %cst_12 = arith.constant 0.000000e+00 : f32
    %110 = vector.broadcast %cst_12 : f32 to vector<1x256xf32>
    %111 = arith.maximumf %109, %110 : vector<1x256xf32>
    %c57 = arith.constant 57 : index
    %112 = memref.load %arg0[%c57] : memref<67xf32, #tpu.memory_space<smem>>
    %c27 = arith.constant 27 : index
    %113 = memref.load %arg0[%c27] : memref<67xf32, #tpu.memory_space<smem>>
    %114 = vector.broadcast %113 : f32 to vector<1x256xf32>
    %115 = arith.mulf %114, %79 : vector<1x256xf32>
    %116 = vector.broadcast %112 : f32 to vector<1x256xf32>
    %117 = arith.addf %116, %115 : vector<1x256xf32>
    %c28 = arith.constant 28 : index
    %118 = memref.load %arg0[%c28] : memref<67xf32, #tpu.memory_space<smem>>
    %119 = vector.broadcast %118 : f32 to vector<1x256xf32>
    %120 = arith.mulf %119, %95 : vector<1x256xf32>
    %121 = arith.addf %117, %120 : vector<1x256xf32>
    %c29 = arith.constant 29 : index
    %122 = memref.load %arg0[%c29] : memref<67xf32, #tpu.memory_space<smem>>
    %123 = vector.broadcast %122 : f32 to vector<1x256xf32>
    %124 = arith.mulf %123, %111 : vector<1x256xf32>
    %125 = arith.addf %121, %124 : vector<1x256xf32>
    %c58 = arith.constant 58 : index
    %126 = memref.load %arg0[%c58] : memref<67xf32, #tpu.memory_space<smem>>
    %c30 = arith.constant 30 : index
    %127 = memref.load %arg0[%c30] : memref<67xf32, #tpu.memory_space<smem>>
    %128 = vector.broadcast %127 : f32 to vector<1x256xf32>
    %129 = arith.mulf %128, %79 : vector<1x256xf32>
    %130 = vector.broadcast %126 : f32 to vector<1x256xf32>
    %131 = arith.addf %130, %129 : vector<1x256xf32>
    %c31 = arith.constant 31 : index
    %132 = memref.load %arg0[%c31] : memref<67xf32, #tpu.memory_space<smem>>
    %133 = vector.broadcast %132 : f32 to vector<1x256xf32>
    %134 = arith.mulf %133, %95 : vector<1x256xf32>
    %135 = arith.addf %131, %134 : vector<1x256xf32>
    %c32 = arith.constant 32 : index
    %136 = memref.load %arg0[%c32] : memref<67xf32, #tpu.memory_space<smem>>
    %137 = vector.broadcast %136 : f32 to vector<1x256xf32>
    %138 = arith.mulf %137, %111 : vector<1x256xf32>
    %139 = arith.addf %135, %138 : vector<1x256xf32>
    %c59 = arith.constant 59 : index
    %140 = memref.load %arg0[%c59] : memref<67xf32, #tpu.memory_space<smem>>
    %c33 = arith.constant 33 : index
    %141 = memref.load %arg0[%c33] : memref<67xf32, #tpu.memory_space<smem>>
    %142 = vector.broadcast %141 : f32 to vector<1x256xf32>
    %143 = arith.mulf %142, %79 : vector<1x256xf32>
    %144 = vector.broadcast %140 : f32 to vector<1x256xf32>
    %145 = arith.addf %144, %143 : vector<1x256xf32>
    %c34 = arith.constant 34 : index
    %146 = memref.load %arg0[%c34] : memref<67xf32, #tpu.memory_space<smem>>
    %147 = vector.broadcast %146 : f32 to vector<1x256xf32>
    %148 = arith.mulf %147, %95 : vector<1x256xf32>
    %149 = arith.addf %145, %148 : vector<1x256xf32>
    %c35 = arith.constant 35 : index
    %150 = memref.load %arg0[%c35] : memref<67xf32, #tpu.memory_space<smem>>
    %151 = vector.broadcast %150 : f32 to vector<1x256xf32>
    %152 = arith.mulf %151, %111 : vector<1x256xf32>
    %153 = arith.addf %149, %152 : vector<1x256xf32>
    %c60 = arith.constant 60 : index
    %154 = memref.load %arg0[%c60] : memref<67xf32, #tpu.memory_space<smem>>
    %c36 = arith.constant 36 : index
    %155 = memref.load %arg0[%c36] : memref<67xf32, #tpu.memory_space<smem>>
    %156 = vector.broadcast %155 : f32 to vector<1x256xf32>
    %157 = arith.mulf %156, %79 : vector<1x256xf32>
    %158 = vector.broadcast %154 : f32 to vector<1x256xf32>
    %159 = arith.addf %158, %157 : vector<1x256xf32>
    %c37 = arith.constant 37 : index
    %160 = memref.load %arg0[%c37] : memref<67xf32, #tpu.memory_space<smem>>
    %161 = vector.broadcast %160 : f32 to vector<1x256xf32>
    %162 = arith.mulf %161, %95 : vector<1x256xf32>
    %163 = arith.addf %159, %162 : vector<1x256xf32>
    %c38 = arith.constant 38 : index
    %164 = memref.load %arg0[%c38] : memref<67xf32, #tpu.memory_space<smem>>
    %165 = vector.broadcast %164 : f32 to vector<1x256xf32>
    %166 = arith.mulf %165, %111 : vector<1x256xf32>
    %167 = arith.addf %163, %166 : vector<1x256xf32>
    %c61 = arith.constant 61 : index
    %168 = memref.load %arg0[%c61] : memref<67xf32, #tpu.memory_space<smem>>
    %c39 = arith.constant 39 : index
    %169 = memref.load %arg0[%c39] : memref<67xf32, #tpu.memory_space<smem>>
    %170 = vector.broadcast %169 : f32 to vector<1x256xf32>
    %171 = arith.mulf %170, %79 : vector<1x256xf32>
    %172 = vector.broadcast %168 : f32 to vector<1x256xf32>
    %173 = arith.addf %172, %171 : vector<1x256xf32>
    %c40 = arith.constant 40 : index
    %174 = memref.load %arg0[%c40] : memref<67xf32, #tpu.memory_space<smem>>
    %175 = vector.broadcast %174 : f32 to vector<1x256xf32>
    %176 = arith.mulf %175, %95 : vector<1x256xf32>
    %177 = arith.addf %173, %176 : vector<1x256xf32>
    %c41 = arith.constant 41 : index
    %178 = memref.load %arg0[%c41] : memref<67xf32, #tpu.memory_space<smem>>
    %179 = vector.broadcast %178 : f32 to vector<1x256xf32>
    %180 = arith.mulf %179, %111 : vector<1x256xf32>
    %181 = arith.addf %177, %180 : vector<1x256xf32>
    %c62 = arith.constant 62 : index
    %182 = memref.load %arg0[%c62] : memref<67xf32, #tpu.memory_space<smem>>
    %c42 = arith.constant 42 : index
    %183 = memref.load %arg0[%c42] : memref<67xf32, #tpu.memory_space<smem>>
    %184 = vector.broadcast %183 : f32 to vector<1x256xf32>
    %185 = arith.mulf %184, %79 : vector<1x256xf32>
    %186 = vector.broadcast %182 : f32 to vector<1x256xf32>
    %187 = arith.addf %186, %185 : vector<1x256xf32>
    %c43 = arith.constant 43 : index
    %188 = memref.load %arg0[%c43] : memref<67xf32, #tpu.memory_space<smem>>
    %189 = vector.broadcast %188 : f32 to vector<1x256xf32>
    %190 = arith.mulf %189, %95 : vector<1x256xf32>
    %191 = arith.addf %187, %190 : vector<1x256xf32>
    %c44 = arith.constant 44 : index
    %192 = memref.load %arg0[%c44] : memref<67xf32, #tpu.memory_space<smem>>
    %193 = vector.broadcast %192 : f32 to vector<1x256xf32>
    %194 = arith.mulf %193, %111 : vector<1x256xf32>
    %195 = arith.addf %191, %194 : vector<1x256xf32>
    %c63 = arith.constant 63 : index
    %196 = memref.load %arg0[%c63] : memref<67xf32, #tpu.memory_space<smem>>
    %c45 = arith.constant 45 : index
    %197 = memref.load %arg0[%c45] : memref<67xf32, #tpu.memory_space<smem>>
    %198 = vector.broadcast %197 : f32 to vector<1x256xf32>
    %199 = arith.mulf %198, %79 : vector<1x256xf32>
    %200 = vector.broadcast %196 : f32 to vector<1x256xf32>
    %201 = arith.addf %200, %199 : vector<1x256xf32>
    %c46 = arith.constant 46 : index
    %202 = memref.load %arg0[%c46] : memref<67xf32, #tpu.memory_space<smem>>
    %203 = vector.broadcast %202 : f32 to vector<1x256xf32>
    %204 = arith.mulf %203, %95 : vector<1x256xf32>
    %205 = arith.addf %201, %204 : vector<1x256xf32>
    %c47 = arith.constant 47 : index
    %206 = memref.load %arg0[%c47] : memref<67xf32, #tpu.memory_space<smem>>
    %207 = vector.broadcast %206 : f32 to vector<1x256xf32>
    %208 = arith.mulf %207, %111 : vector<1x256xf32>
    %209 = arith.addf %205, %208 : vector<1x256xf32>
    %c64 = arith.constant 64 : index
    %210 = memref.load %arg0[%c64] : memref<67xf32, #tpu.memory_space<smem>>
    %c48 = arith.constant 48 : index
    %211 = memref.load %arg0[%c48] : memref<67xf32, #tpu.memory_space<smem>>
    %212 = vector.broadcast %211 : f32 to vector<1x256xf32>
    %213 = arith.mulf %212, %79 : vector<1x256xf32>
    %214 = vector.broadcast %210 : f32 to vector<1x256xf32>
    %215 = arith.addf %214, %213 : vector<1x256xf32>
    %c49 = arith.constant 49 : index
    %216 = memref.load %arg0[%c49] : memref<67xf32, #tpu.memory_space<smem>>
    %217 = vector.broadcast %216 : f32 to vector<1x256xf32>
    %218 = arith.mulf %217, %95 : vector<1x256xf32>
    %219 = arith.addf %215, %218 : vector<1x256xf32>
    %c50 = arith.constant 50 : index
    %220 = memref.load %arg0[%c50] : memref<67xf32, #tpu.memory_space<smem>>
    %221 = vector.broadcast %220 : f32 to vector<1x256xf32>
    %222 = arith.mulf %221, %111 : vector<1x256xf32>
    %223 = arith.addf %219, %222 : vector<1x256xf32>
    %c65 = arith.constant 65 : index
    %224 = memref.load %arg0[%c65] : memref<67xf32, #tpu.memory_space<smem>>
    %c51 = arith.constant 51 : index
    %225 = memref.load %arg0[%c51] : memref<67xf32, #tpu.memory_space<smem>>
    %226 = vector.broadcast %225 : f32 to vector<1x256xf32>
    %227 = arith.mulf %226, %79 : vector<1x256xf32>
    %228 = vector.broadcast %224 : f32 to vector<1x256xf32>
    %229 = arith.addf %228, %227 : vector<1x256xf32>
    %c52 = arith.constant 52 : index
    %230 = memref.load %arg0[%c52] : memref<67xf32, #tpu.memory_space<smem>>
    %231 = vector.broadcast %230 : f32 to vector<1x256xf32>
    %232 = arith.mulf %231, %95 : vector<1x256xf32>
    %233 = arith.addf %229, %232 : vector<1x256xf32>
    %c53 = arith.constant 53 : index
    %234 = memref.load %arg0[%c53] : memref<67xf32, #tpu.memory_space<smem>>
    %235 = vector.broadcast %234 : f32 to vector<1x256xf32>
    %236 = arith.mulf %235, %111 : vector<1x256xf32>
    %237 = arith.addf %233, %236 : vector<1x256xf32>
    %c66 = arith.constant 66 : index
    %238 = memref.load %arg0[%c66] : memref<67xf32, #tpu.memory_space<smem>>
    %c54 = arith.constant 54 : index
    %239 = memref.load %arg0[%c54] : memref<67xf32, #tpu.memory_space<smem>>
    %240 = vector.broadcast %239 : f32 to vector<1x256xf32>
    %241 = arith.mulf %240, %79 : vector<1x256xf32>
    %242 = vector.broadcast %238 : f32 to vector<1x256xf32>
    %243 = arith.addf %242, %241 : vector<1x256xf32>
    %c55 = arith.constant 55 : index
    %244 = memref.load %arg0[%c55] : memref<67xf32, #tpu.memory_space<smem>>
    %245 = vector.broadcast %244 : f32 to vector<1x256xf32>
    %246 = arith.mulf %245, %95 : vector<1x256xf32>
    %247 = arith.addf %243, %246 : vector<1x256xf32>
    %c56 = arith.constant 56 : index
    %248 = memref.load %arg0[%c56] : memref<67xf32, #tpu.memory_space<smem>>
    %249 = vector.broadcast %248 : f32 to vector<1x256xf32>
    %250 = arith.mulf %249, %111 : vector<1x256xf32>
    %251 = arith.addf %247, %250 : vector<1x256xf32>
    %252 = tpu.concatenate %125, %139, %153, %167, %181, %195, %209, %223, %237, %251 in 0 : vector<1x256xf32>, vector<1x256xf32>, vector<1x256xf32>, vector<1x256xf32>, vector<1x256xf32>, vector<1x256xf32>, vector<1x256xf32>, vector<1x256xf32>, vector<1x256xf32>, vector<1x256xf32> -> vector<10x256xf32>
    %c0_13 = arith.constant 0 : index
    %c0_14 = arith.constant 0 : index
    %253 = vector.load %arg2[%c0_13, %c0_14] : memref<10x256xf32, #tpu.memory_space<vmem>>, vector<10x256xf32>
    tpu.vector_store %arg2[%c0_13, %c0_14], %252 {strides = array<i32>} : memref<10x256xf32, #tpu.memory_space<vmem>>, vector<10x256xf32>,
    return
  }
}

</mosaic_0001>

<bundles_post_ra>
// kernel: classification_net_forward.1
= control target key start
LH: loop header
LB: loop body
LE: loop exit
PB: predicated region body
PF: predicated region fallthrough
CT: control target
= control target key end

     0   :  { %7 = vsyncpa [#allocation5], 0  ;;  %s900_s0 = inlined_call_operand.vmem [shape: f32[67], index: 0, kind: input, shape index: {}]   ;;  %s901_s1 = inlined_call_operand.hbm [shape: f32[4,256], index: 1, kind: input, shape index: {}]   ;;  %s902_s2 = inlined_call_operand.hbm [shape: f32[10,256], index: 2, kind: output, shape index: {}]  }
   0x1   :  { %8 = vsyncpa [#allocation3], 0 }
   0x2   :  { %9 = vsyncpa [#allocation4], 0  ;;  %s16_s11 = sshll.u32 %s900_s0, 4  ;;  %s17_s11 = int_to_ptr.vmem [resolvable:$true] %s16_s11 }
   0x3   :  { %s512_s12 = scalar_lea.vmem %s17_s11, 16  ;;  %p517_p1 = scmp.lt.s32.totalorder %s17_s11, %s17_s11 }
   0x4   :  { %p513_p0 = scmp.ne.s32.totalorder %s17_s11, %s512_s12  ;;  %p518_p2 = scmp.lt.s32.totalorder %s512_s12, %s512_s12 }
   0x6   :  { %p519_p3 = por %p518_p2, %p517_p1 }
   0x8   :  { %p520_p4 = pnand %p519_p3, %p513_p0 }
   0xa   :  { %523 = shalt.err (!%p520_p4)
}
   0xb   :  { %s574_s13 = smov [#allocation2]   ;;  %s575_s14 = smov [#allocation6]  }
   0xc   :  { %19 = dma.vmem_to_smem %s17_s11, 16, %s574_s13, [#allocation5]  }
   0xd   :  { %s26_s15 = sshll.u32 %s575_s14, 4  ;;  %s524_s18 = scalar_lea.hbm %s901_s1, 128  ;;  %s27_s15 = int_to_ptr.vmem [resolvable:$true] %s26_s15 }
   0xe   :  { %p525_p5 = scmp.ne.s32.totalorder %s901_s1, %s524_s18  ;;  %p528_p6 = scmp.lt.u32.totalorder %s524_s18, %s901_s1 }
  0x10   :  { %p530_p7 = pnand %p528_p6, %p525_p5 }
  0x12   :  { %533 = shalt.err (!%p530_p7)
}
  0x13   :  { %s534_s22 = scalar_lea.vmem %s27_s15, 128  ;;  %p539_p9 = scmp.lt.s32.totalorder %s27_s15, %s27_s15 }
  0x14   :  { %p535_p8 = scmp.ne.s32.totalorder %s27_s15, %s534_s22  ;;  %p540_p10 = scmp.lt.s32.totalorder %s534_s22, %s534_s22 }
  0x16   :  { %p541_p11 = por %p540_p10, %p539_p9 }
  0x18   :  { %p542_p12 = pnand %p541_p11, %p535_p8 }
  0x1a   :  { %545 = shalt.err (!%p542_p12)
}
  0x1b   :  { %29 = dma.hbm_to_vmem [thread:$0]  %s901_s1, 128, %s27_s15, [#allocation3]  }
  0x1c   :  { %568 = dma.done.wait [#allocation5], 16  }
  0x1d   :  { %569 = vsyncadd [#allocation5], 4294967280 }
  0x1e   :  { %570 = dma.done.wait [#allocation3], 128  }
  0x1f   :  { %571 = vsyncadd [#allocation3], 4294967168 }
  0x20   :  { %36 = sfence }
  0x21   :  { %v287_v0 = vlaneseq  ;;  %s609_s25 = sld [smem:[#allocation2 + $0xc]]  ;;  %s45_s26 = sld [smem:[#allocation2]]  ;;  %v37_v1 = vld [vmem:[#allocation6] ss:$4 sm:$0x3]  ;;  %vm396_vm0 = vcmask 1040384  }
  0x22   :  { %s442_s27 = sld [smem:[#allocation2 + $0x1]]  ;;  %s443_s28 = sld [smem:[#allocation2 + $0x2]]  ;;  %v39_v3 = vld [vmem:[#allocation6 + $0x1] ss:$4 sm:$0x3]  ;;  %vm399_vm1 = vcmask 1041408  }
  0x23   :  { %s444_s29 = sld [smem:[#allocation2 + $0x3]]  ;;  %s611_s30 = sld [smem:[#allocation2 + $0xd]]  ;;  %v288_v2 = vshrl.u32 %v287_v0, 7  ;;  %v41_v4 = vld [vmem:[#allocation6 + $0x2] ss:$4 sm:$0x3] }
  0x24   :  { %s446_s1 = sld [smem:[#allocation2 + $0x4]]  ;;  %s447_s3 = sld [smem:[#allocation2 + $0x5]]  ;;  %v43_v5 = vld [vmem:[#allocation6 + $0x3] ss:$4 sm:$0x3]  ;;  %vm402_vm2 = vcmask 1042432  }
  0x25   :  { %s613_s4 = sld [smem:[#allocation2 + $0x6]]  ;;  %s615_s5 = sld [smem:[#allocation2 + $0x7]]  ;;  %v626_v8 = vsub.s32 0, %v288_v2  ;;  %v632_v12 = vsub.s32 1, %v288_v2  ;;  %vm405_vm3 = vcmask 1043456   ;;  %vm408_vm4 = vcmask 1044480  }
  0x26   :  { %s617_s6 = sld [smem:[#allocation2 + $0xe]]  ;;  %s619_s7 = sld [smem:[#allocation2 + $0x8]]  ;;  %vm411_vm5 = vcmask 1045504   ;;  %vm414_vm6 = vcmask 1046528  }
  0x27   :  { %v46_v6 = vstv %s45_s26  ;;  %v48_v7 = vstv %s609_s25  ;;  %s622_s8 = sld [smem:[#allocation2 + $0x9]]  ;;  %s624_s9 = sld [smem:[#allocation2 + $0xa]] }
  0x28   :  { %v47_v9 = vmul.f32 %v46_v6, %v37_v1  ;;  %v51_v10 = vstv %s442_s27  ;;  %v55_v11 = vstv %s443_s28  ;;  %s628_s10 = sld [smem:[#allocation2 + $0xb]]  ;;  %s630_s11 = sld [smem:[#allocation2 + $0x18]] }
  0x29   :  { %v52_v13 = vmul.f32 %v51_v10, %v39_v3  ;;  %v56_v14 = vmul.f32 %v55_v11, %v41_v4  ;;  %v59_v15 = vstv %s444_s29  ;;  %v67_v16 = vstv %s611_s30  ;;  %s635_s12 = sld [smem:[#allocation2 + $0xf]]  ;;  %s637_s13 = sld [smem:[#allocation2 + $0x10]] }
  0x2a   :  { %v49_v17 = vadd.f32 %v48_v7, %v47_v9  ;;  %v60_v18 = vmul.f32 %v59_v15, %v43_v5  ;;  %v65_v19 = vstv %s446_s1  ;;  %v70_v20 = vstv %s447_s3  ;;  %s639_s14 = sld [smem:[#allocation2 + $0x11]]  ;;  %s645_s16 = sld [smem:[#allocation2 + $0x12]] }
  0x2b   :  { %s641_s15 = sld [smem:[#allocation2 + $0x19]]  ;;  %v66_v21 = vmul.f32 %v65_v19, %v37_v1  ;;  %v71_v22 = vmul.f32 %v70_v20, %v39_v3  ;;  %v74_v23 = vstv %s613_s4  ;;  %v78_v24 = vstv %s615_s5  ;;  %s647_s17 = sld [smem:[#allocation2 + $0x13]] }
  0x2c   :  { %v53_v25 = vadd.f32 %v52_v13, %v49_v17  ;;  %v75_v26 = vmul.f32 %v74_v23, %v41_v4  ;;  %v79_v27 = vmul.f32 %v78_v24, %v43_v5  ;;  %v84_v28 = vstv %s619_s7  ;;  %s650_s18 = sld [smem:[#allocation2 + $0x14]]  ;;  %s652_s19 = sld [smem:[#allocation2 + $0x1a]] }
  0x2d   :  { %v68_v29 = vadd.f32 %v67_v16, %v66_v21  ;;  %v85_v30 = vmul.f32 %v84_v28, %v37_v1  ;;  %v86_v31 = vstv %s617_s6  ;;  %v89_v32 = vstv %s622_s8  ;;  %s656_s20 = sld [smem:[#allocation2 + $0x15]]  ;;  %s658_s0 = sld [smem:[#allocation2 + $0x16]] }
  0x2e   :  { %v57_v33 = vadd.f32 %v56_v14, %v53_v25  ;;  %v90_v34 = vmul.f32 %v89_v32, %v39_v3  ;;  %v93_v35 = vstv %s624_s9  ;;  %v97_v36 = vstv %s628_s10  ;;  %s662_s21 = sld [smem:[#allocation2 + $0x17]]  ;;  %s664_s22 = sld [smem:[#allocation2 + $0x39]] }
  0x2f   :  { %v72_v37 = vadd.f32 %v71_v22, %v68_v29  ;;  %v87_v38 = vadd.f32 %v86_v31, %v85_v30  ;;  %v94_v39 = vmul.f32 %v93_v35, %v41_v4  ;;  %v98_v40 = vmul.f32 %v97_v36, %v43_v5  ;;  %s666_s23 = sld [smem:[#allocation2 + $0x1b]]  ;;  %s668_s24 = sld [smem:[#allocation2 + $0x1c]] }
  0x30   :  { %v61_v41 = vadd.f32 %v60_v18, %v57_v33  ;;  %v103_v42 = vstv %s635_s12  ;;  %v105_v43 = vstv %s630_s11  ;;  %v108_v44 = vstv %s637_s13  ;;  %s673_s25 = sld [smem:[#allocation2 + $0x1d]]  ;;  %s675_s26 = sld [smem:[#allocation2 + $0x3a]] }
  0x31   :  { %v76_v45 = vadd.f32 %v75_v26, %v72_v37  ;;  %v91_v46 = vadd.f32 %v90_v34, %v87_v38  ;;  %v112_v47 = vstv %s639_s14  ;;  %v118_v48 = vstv %s645_s16  ;;  %s679_s27 = sld [smem:[#allocation2 + $0x1e]]  ;;  %s681_s28 = sld [smem:[#allocation2 + $0x1f]] }
  0x32   :  { %v62_v49 = vmax.f32 %v61_v41, 0.0  ;;  %v120_v50 = vstv %s641_s15  ;;  %v123_v51 = vstv %s647_s17  ;;  %v127_v52 = vstv %s650_s18  ;;  %s686_s29 = sld [smem:[#allocation2 + $0x20]]  ;;  %s688_s30 = sld [smem:[#allocation2 + $0x3b]] }
  0x33   :  { %v80_v53 = vadd.f32 %v79_v27, %v76_v45  ;;  %v95_v54 = vadd.f32 %v94_v39, %v91_v46  ;;  %v133_v55 = vstv %s656_s20  ;;  %v135_v56 = vstv %s652_s19  ;;  %s692_s1 = sld [smem:[#allocation2 + $0x21]]  ;;  %s694_s3 = sld [smem:[#allocation2 + $0x22]] }
  0x34   :  { %v104_v57 = vmul.f32 %v103_v42, %v62_v49  ;;  %v119_v58 = vmul.f32 %v118_v48, %v62_v49  ;;  %v134_v59 = vmul.f32 %v133_v55, %v62_v49  ;;  %v138_v60 = vstv %s658_s0  ;;  %s697_s4 = sld [smem:[#allocation2 + $0x23]]  ;;  %s699_s5 = sld [smem:[#allocation2 + $0x3c]] }
  0x35   :  { %v81_v61 = vmax.f32 %v80_v53, 0.0  ;;  %v99_v62 = vadd.f32 %v98_v40, %v95_v54  ;;  %v142_v63 = vstv %s662_s21  ;;  %v148_v0 = vstv %s666_s23  ;;  %s703_s6 = sld [smem:[#allocation2 + $0x24]]  ;;  %s705_s7 = sld [smem:[#allocation2 + $0x25]] }
  0x36   :  { %v106_v1 = vadd.f32 %v105_v43, %v104_v57  ;;  %v121_v2 = vadd.f32 %v120_v50, %v119_v58  ;;  %v136_v3 = vadd.f32 %v135_v56, %v134_v59  ;;  %v150_v4 = vstv %s664_s22  ;;  %s708_s8 = sld [smem:[#allocation2 + $0x26]]  ;;  %s710_s9 = sld [smem:[#allocation2 + $0x3d]] }
  0x37   :  { %v100_v5 = vmax.f32 %v99_v62, 0.0  ;;  %v109_v6 = vmul.f32 %v108_v44, %v81_v61  ;;  %v124_v7 = vmul.f32 %v123_v51, %v81_v61  ;;  %v139_v9 = vmul.f32 %v138_v60, %v81_v61  ;;  %s712_s10 = sld [smem:[#allocation2 + $0x27]]  ;;  %s722_s11 = sld [smem:[#allocation2 + $0x28]] }
  0x38   :  { %v153_v10 = vstv %s668_s24  ;;  %v157_v11 = vstv %s673_s25  ;;  %v162_v13 = vstv %s679_s27  ;;  %v164_v14 = vstv %s675_s26  ;;  %s727_s12 = sld [smem:[#allocation2 + $0x29]]  ;;  %s740_s13 = sld [smem:[#allocation2 + $0x3e]] }
  0x39   :  { %v110_v15 = vadd.f32 %v109_v6, %v106_v1  ;;  %v113_v16 = vmul.f32 %v112_v47, %v100_v5  ;;  %v125_v17 = vadd.f32 %v124_v7, %v121_v2  ;;  %v128_v18 = vmul.f32 %v127_v52, %v100_v5  ;;  %s742_s14 = sld [smem:[#allocation2 + $0x2a]]  ;;  %s748_s15 = sld [smem:[#allocation2 + $0x2b]] }
  0x3a   :  { %v140_v19 = vadd.f32 %v139_v9, %v136_v3  ;;  %v143_v20 = vmul.f32 %v142_v63, %v100_v5  ;;  %v167_v21 = vstv %s681_s28  ;;  %v171_v22 = vstv %s686_s29  ;;  %s750_s16 = sld [smem:[#allocation2 + $0x2c]]  ;;  %s756_s17 = sld [smem:[#allocation2 + $0x3f]] }
  0x3b   :  { %v114_v23 = vadd.f32 %v113_v16, %v110_v15  ;;  %v129_v24 = vadd.f32 %v128_v18, %v125_v17  ;;  %v176_v25 = vstv %s692_s1  ;;  %v178_v26 = vstv %s688_s30  ;;  %s758_s18 = sld [smem:[#allocation2 + $0x2d]]  ;;  %s762_s19 = sld [smem:[#allocation2 + $0x2e]] }
  0x3c   :  { %v144_v27 = vadd.f32 %v143_v20, %v140_v19  ;;  %v181_v28 = vstv %s694_s3  ;;  %v185_v29 = vstv %s697_s4  ;;  %v190_v30 = vstv %s703_s6  ;;  %s764_s20 = sld [smem:[#allocation2 + $0x2f]]  ;;  %s769_s0 = sld [smem:[#allocation2 + $0x40]] }
  0x3d   :  { %v729_v31 = vmax.f32 %v114_v23, 0.0  ;;  %v731_v32 = vmax.f32 %v129_v24, 0.0  ;;  %v192_v33 = vstv %s699_s5  ;;  %v195_v34 = vstv %s705_s7  ;;  %s771_s21 = sld [smem:[#allocation2 + $0x30]]  ;;  %s776_s22 = sld [smem:[#allocation2 + $0x31]] }
  0x3e   :  { %v735_v35 = vmax.f32 %v144_v27, 0.0  ;;  %v199_v36 = vstv %s708_s8  ;;  %v204_v37 = vstv %s712_s10  ;;  %v206_v38 = vstv %s710_s9  ;;  %s778_s23 = sld [smem:[#allocation2 + $0x32]]  ;;  %s814_s24 = sld [smem:[#allocation2 + $0x41]] }
  0x3f   :  { %v149_v39 = vmul.f32 %v148_v0, %v729_v31  ;;  %v154_v40 = vmul.f32 %v153_v10, %v731_v32  ;;  %v163_v41 = vmul.f32 %v162_v13, %v729_v31  ;;  %v168_v42 = vmul.f32 %v167_v21, %v731_v32  ;;  %s816_s25 = sld [smem:[#allocation2 + $0x33]]  ;;  %s819_s26 = sld [smem:[#allocation2 + $0x34]] }
  0x40   :  { %v158_v43 = vmul.f32 %v157_v11, %v735_v35  ;;  %v172_v44 = vmul.f32 %v171_v22, %v735_v35  ;;  %v177_v45 = vmul.f32 %v176_v25, %v729_v31  ;;  %v182_v46 = vmul.f32 %v181_v28, %v731_v32  ;;  %s828_s27 = sld [smem:[#allocation2 + $0x35]]  ;;  %s830_s28 = sld [smem:[#allocation2 + $0x36]] }
  0x41   :  { %v151_v47 = vadd.f32 %v150_v4, %v149_v39  ;;  %v165_v48 = vadd.f32 %v164_v14, %v163_v41  ;;  %v186_v49 = vmul.f32 %v185_v29, %v735_v35  ;;  %v191_v50 = vmul.f32 %v190_v30, %v729_v31  ;;  %s834_s29 = sld [smem:[#allocation2 + $0x42]]  ;;  %s843_s30 = sld [smem:[#allocation2 + $0x37]] }
  0x42   :  { %v179_v51 = vadd.f32 %v178_v26, %v177_v45  ;;  %v196_v52 = vmul.f32 %v195_v34, %v731_v32  ;;  %v200_v53 = vmul.f32 %v199_v36, %v735_v35  ;;  %v205_v54 = vmul.f32 %v204_v37, %v729_v31  ;;  %s845_s1 = sld [smem:[#allocation2 + $0x38]]  ;;  %s576_s3 = smov [#allocation7]  }
  0x43   :  { %v155_v55 = vadd.f32 %v154_v40, %v151_v47  ;;  %v169_v56 = vadd.f32 %v168_v42, %v165_v48  ;;  %v193_v57 = vadd.f32 %v192_v33, %v191_v50  ;;  %v209_v58 = vstv %s722_s11  ;;  %s428_s4 = sshll.u32 %s576_s3, 4  ;;  %s429_s4 = int_to_ptr.vmem [resolvable:$true] %s428_s4 }
  0x44   :  { %v183_v59 = vadd.f32 %v182_v46, %v179_v51  ;;  %v207_v60 = vadd.f32 %v206_v38, %v205_v54  ;;  %v210_v61 = vmul.f32 %v209_v58, %v731_v32  ;;  %v213_v62 = vstv %s727_s12  ;;  %s546_s5 = scalar_lea.vmem %s429_s4, 512  ;;  %p551_p0 = scmp.lt.s32.totalorder %s429_s4, %s429_s4 }
  0x45   :  { %v780_v63 = vadd.f32 %v158_v43, %v155_v55  ;;  %v782_v0 = vadd.f32 %v172_v44, %v169_v56  ;;  %v197_v1 = vadd.f32 %v196_v52, %v193_v57  ;;  %v214_v2 = vmul.f32 %v213_v62, %v735_v35  ;;  %p547_p13 = scmp.ne.s32.totalorder %s429_s4, %s546_s5  ;;  %p552_p1 = scmp.lt.s32.totalorder %s546_s5, %s546_s5 }
  0x46   :  { %v785_v3 = vadd.f32 %v186_v49, %v183_v59  ;;  %v211_v4 = vadd.f32 %v210_v61, %v207_v60  ;;  %v218_v5 = vstv %s742_s14  ;;  %v220_v6 = vstv %s740_s13 }
  0x47   :  { %v789_v7 = vadd.f32 %v200_v53, %v197_v1  ;;  %v219_v9 = vmul.f32 %v218_v5, %v729_v31  ;;  %v223_v10 = vstv %s748_s15  ;;  %v227_v11 = vstv %s750_s16  ;;  %p553_p2 = por %p552_p1, %p551_p0 }
  0x48   :  { %v794_v13 = vadd.f32 %v214_v2, %v211_v4  ;;  %v224_v14 = vmul.f32 %v223_v10, %v731_v32  ;;  %v228_v15 = vmul.f32 %v227_v11, %v735_v35  ;;  %v232_v16 = vstv %s758_s18 }
  0x49   :  { %v221_v17 = vadd.f32 %v220_v6, %v219_v9  ;;  %v233_v18 = vmul.f32 %v232_v16, %v729_v31  ;;  %v234_v19 = vstv %s756_s17  ;;  %v237_v20 = vstv %s762_s19  ;;  %p554_p3 = pnand %p553_p2, %p547_p13 }
  0x4a   :  { %v238_v21 = vmul.f32 %v237_v20, %v731_v32  ;;  %v241_v22 = vstv %s764_s20  ;;  %v246_v23 = vstv %s771_s21  ;;  %v248_v24 = vstv %s769_s0 }
  0x4b   :  { %v225_v25 = vadd.f32 %v224_v14, %v221_v17  ;;  %v235_v26 = vadd.f32 %v234_v19, %v233_v18  ;;  %v242_v27 = vmul.f32 %v241_v22, %v735_v35  ;;  %v247_v28 = vmul.f32 %v246_v23, %v729_v31 }
  0x4c   :  { %v251_v29 = vstv %s776_s22  ;;  %v255_v30 = vstv %s778_s23  ;;  %v290_v33 = vrot.slane %v780_v63, %v626_v8  ;;  %v301_v34 = vrot.slane %v782_v0, %v626_v8 }
  0x4d   :  { %v229_v36 = vadd.f32 %v228_v15, %v225_v25  ;;  %v239_v37 = vadd.f32 %v238_v21, %v235_v26  ;;  %v249_v38 = vadd.f32 %v248_v24, %v247_v28  ;;  %v252_v39 = vmul.f32 %v251_v29, %v731_v32 }
  0x4e   :  { %v256_v40 = vmul.f32 %v255_v30, %v735_v35  ;;  %v312_v41 = vrot.slane %v785_v3, %v626_v8  ;;  %v323_v42 = vrot.slane %v789_v7, %v626_v8  ;;  %v334_v43 = vrot.slane %v794_v13, %v626_v8 }
  0x4f   :  { %v243_v44 = vadd.f32 %v242_v27, %v239_v37  ;;  %v253_v45 = vadd.f32 %v252_v39, %v249_v38  ;;  %v345_v46 = vrot.slane %v229_v36, %v626_v8  ;;  %v397_v47 = vsel %vm396_vm0, %v290_v33, %v301_v34 }
  0x50   :  { %v400_v48 = vsel %vm399_vm1, %v397_v47, %v312_v41  ;;  %v294_v49 = vrot.slane %v780_v63, %v632_v12  ;;  %v305_v50 = vrot.slane %v782_v0, %v632_v12  ;;  %v316_v51 = vrot.slane %v785_v3, %v632_v12 }
  0x51   :  { %v257_v52 = vadd.f32 %v256_v40, %v253_v45  ;;  %v356_v53 = vrot.slane %v243_v44, %v626_v8  ;;  %v403_v54 = vsel %vm402_vm2, %v400_v48, %v323_v42  ;;  %v327_v55 = vrot.slane %v789_v7, %v632_v12 }
  0x52   :  { %v406_v56 = vsel %vm405_vm3, %v403_v54, %v334_v43  ;;  %v338_v57 = vrot.slane %v794_v13, %v632_v12  ;;  %v349_v58 = vrot.slane %v229_v36, %v632_v12  ;;  %v360_v59 = vrot.slane %v243_v44, %v632_v12 }
  0x53   :  { %v367_v60 = vrot.slane %v257_v52, %v626_v8  ;;  %v409_v61 = vsel %vm408_vm4, %v406_v56, %v345_v46  ;;  %v371_v62 = vrot.slane %v257_v52, %v632_v12  ;;  %v398_v63 = vsel %vm396_vm0, %v294_v49, %v305_v50 }
  0x54   :  { %v412_v0 = vsel %vm411_vm5, %v409_v61, %v356_v53  ;;  %v401_v1 = vsel %vm399_vm1, %v398_v63, %v316_v51  ;;  %v260_v2 = vstv %s816_s25  ;;  %v262_v3 = vstv %s814_s24 }
  0x55   :  { %v415_v4 = vsel %vm414_vm6, %v412_v0, %v367_v60  ;;  %v404_v5 = vsel %vm402_vm2, %v401_v1, %v327_v55  ;;  %v261_v6 = vmul.f32 %v260_v2, %v729_v31  ;;  %v265_v7 = vstv %s819_s26 }
  0x56   :  { %419 = vst [vmem:[#allocation7] sm:$0xff] %v415_v4  ;;  %v407_v9 = vsel %vm405_vm3, %v404_v5, %v338_v57  ;;  %v266_v10 = vmul.f32 %v265_v7, %v731_v32  ;;  %v269_v11 = vstv %s828_s27  ;;  %v274_v13 = vstv %s830_s28 }
  0x57   :  { %v410_v14 = vsel %vm408_vm4, %v407_v9, %v349_v58  ;;  %v263_v15 = vadd.f32 %v262_v3, %v261_v6  ;;  %v270_v16 = vmul.f32 %v269_v11, %v735_v35  ;;  %v275_v17 = vmul.f32 %v274_v13, %v729_v31 }
  0x58   :  { %v413_v18 = vsel %vm411_vm5, %v410_v14, %v360_v59  ;;  %v276_v19 = vstv %s834_s29  ;;  %v279_v20 = vstv %s843_s30  ;;  %v283_v21 = vstv %s845_s1 }
  0x59   :  { %v416_v22 = vsel %vm414_vm6, %v413_v18, %v371_v62  ;;  %v267_v23 = vadd.f32 %v266_v10, %v263_v15  ;;  %v277_v24 = vadd.f32 %v276_v19, %v275_v17  ;;  %v280_v25 = vmul.f32 %v279_v20, %v731_v32 }
  0x5a   :  { %420 = vst [vmem:[#allocation7 + $0x8] sm:$0xff] %v416_v22  ;;  %v284_v26 = vmul.f32 %v283_v21, %v735_v35 }
  0x5b   :  { %v271_v27 = vadd.f32 %v270_v16, %v267_v23  ;;  %v281_v28 = vadd.f32 %v280_v25, %v277_v24 }
  0x5d   :  { %v285_v29 = vadd.f32 %v284_v26, %v281_v28  ;;  %v378_v30 = vrot.slane %v271_v27, %v626_v8  ;;  %v382_v31 = vrot.slane %v271_v27, %v632_v12 }
  0x5f   :  { %v389_v33 = vrot.slane %v285_v29, %v626_v8  ;;  %v393_v34 = vrot.slane %v285_v29, %v632_v12 }
  0x61   :  { %v417_v36 = vsel %vm396_vm0, %v378_v30, %v389_v33  ;;  %v418_v32 = vsel %vm396_vm0, %v382_v31, %v393_v34 }
  0x62   :  { %421 = vst [vmem:[#allocation7 + $0x10] sm:$0x3] %v417_v36  ;;  %422 = vst [vmem:[#allocation7 + $0x18] sm:$0x3] %v418_v32 }
  0x63   :  { %557 = shalt.err (!%p554_p3)
}
  0x64   :  { %s558_s8 = scalar_lea.hbm %s902_s2, 512 }
  0x65   :  { %p559_p4 = scmp.ne.s32.totalorder %s902_s2, %s558_s8  ;;  %p562_p5 = scmp.lt.u32.totalorder %s558_s8, %s902_s2 }
  0x67   :  { %p564_p6 = pnand %p562_p5, %p559_p4 }
  0x69   :  { %567 = shalt.err (!%p564_p6)
}
  0x6a   :  { %s577_s13 = smov 256   ;;  %s578_s14 = smov 16  }
  0x6b   :  { %434 = dma.vmem_to_hbm [thread:$0]  %s429_s4, 512, %s902_s2, [#allocation4], %s577_s13, %s577_s13, %s578_s14  }
  0x6c   :  { %572 = dma.done.wait [#allocation4], 512  }
  0x6d   :  { %573 = vsyncadd [#allocation4], 4294966784 }
  0x6e   :  { %438 = vsyncpa [#allocation3], 1 }
  0x6f   :  { %439 = vsyncpa [#allocation4], 1 }
  0x70   :  { %440 = vsyncpa [#allocation5], 1 }

</bundles_post_ra>
